<compile_context>
chip_gen: v6e
topology: v6e:2x2x1
jax: 0.10.0
libtpu: 0.0.40
codegen_flags: <defaults>
</compile_context>

<pallas_src>
import functools

import jax
import jax.numpy as jnp
from jax.experimental import pallas as pl
from jax.experimental.pallas import tpu as pltpu

MARGIN = 1.0      # nn.Module ctor default
EPS = 1e-6        # F.pairwise_distance default eps (added to the diff)

# Perf review: per-step per-input tiles in the multi-MiB range hit 85%+ of the
# HBM roofline; v7x (3.2 TB/s) wants the upper end of the range.
TARGET_BYTES_PER_INPUT_PER_STEP = 12 * 1024 * 1024


def _round_up(x, m):
    return (x + m - 1) // m * m


def _sublane_quantum(dtype):
    # Sub-32-bit dtypes pack 2/4 rows per sublane: round batch tiles to the
    # packing quantum so bf16/int8 blocks avoid partial-sublane handling.
    return {4: 8, 2: 16, 1: 32}.get(jnp.dtype(dtype).itemsize, 8)


def _vmem_capacity_bytes():
    try:
        return int(pltpu.get_tpu_info().vmem_capacity_bytes)
    except Exception:
        return 64 * 1024 * 1024   # v7x physical size: a safe lower bound everywhere


def _contrastive_loss_kernel(f1_ref, f2_ref, lab_ref, out_ref, acc_ref, *,
                             batch, tile_rows, tiles_per_split, needs_mask):
    i = pl.program_id(1)                       # inner accumulation axis

    @pl.when(i == 0)
    def _():
        acc_ref[...] = jnp.zeros_like(acc_ref)

    f1 = f1_ref[...].astype(jnp.float32)       # (TB, D) upcast in-register only
    f2 = f2_ref[...].astype(jnp.float32)       # (TB, D)
    labels = lab_ref[...].astype(jnp.float32)  # (TB, 1)

    diff = f1 - f2 + EPS                                     # torch.pairwise_distance
    sq_dist = jnp.sum(diff * diff, axis=-1, keepdims=True)   # (TB, 1)
    dist = jnp.sqrt(sq_dist)                                  # EUP sqrt

    clamped = jnp.maximum(MARGIN - dist, 0.0)
    per_row = (1.0 - labels) * sq_dist + labels * (clamped * clamped)   # (TB, 1)

    if needs_mask:
        # jnp.where (not multiply): the ragged edge block and clamped replay
        # tiles contain uninitialized data that may be NaN/Inf.
        c = pl.program_id(0)
        global_tile = c * tiles_per_split + i
        row_ids = (jax.lax.broadcasted_iota(jnp.int32, (tile_rows, 1), 0)
                   + global_tile * tile_rows)
        per_row = jnp.where(row_ids < batch, per_row, 0.0)

    acc_ref[...] += per_row                    # resident (TB,1) VMEM accumulator

    @pl.when(i == pl.num_programs(1) - 1)
    def _():
        # Single cross-sublane reduce per split; lane-dense (1,1,128) output block.
        total = jnp.sum(acc_ref[...])
        out_ref[...] = jnp.broadcast_to(total, out_ref.shape).astype(jnp.float32)


def contrastive_loss(features1, features2, labels, *, tile_rows=None, num_splits=None):
    B, D = features1.shape
    labels2d = labels.reshape(B, 1).astype(jnp.float32)

    quantum = max(_sublane_quantum(features1.dtype), _sublane_quantum(features2.dtype))

    # --- tile sizing (bytes-first, VMEM-aware on every generation) ---
    vmem = _vmem_capacity_bytes()
    tile_budget = (vmem * 2) // 5          # ~40% of physical VMEM for our buffers
    vmem_limit = int((vmem * 3) // 5)      # scoped limit with headroom above the budget

    feat_row_bytes = D * (features1.dtype.itemsize + features2.dtype.itemsize)
    lane_row_bytes = 128 * 4               # (TB,1) f32 VMEM block lane-pads to (TB,128)
    # 2x double-buffered features + 2x double-buffered labels + 1x acc scratch:
    per_row_vmem = 2 * feat_row_bytes + 2 * lane_row_bytes + lane_row_bytes

    tb_vmem_cap = max(quantum, (tile_budget // per_row_vmem) // quantum * quantum)
    tb_target_cap = max(
        quantum,
        (TARGET_BYTES_PER_INPUT_PER_STEP // max(D * features1.dtype.itemsize, 1))
        // quantum * quantum)

    if tile_rows is None:
        TB = min(tb_vmem_cap, tb_target_cap, _round_up(B, quantum))
    else:
        TB = min(_round_up(int(tile_rows), quantum), _round_up(B, quantum))
    TB = max(quantum, int(TB))
    # TODO(synk): for D so large that even a quantum-row block blows VMEM (v7x),
    # add a K (feature-axis) grid dim with a partial-sq_dist scratch; for D<128,
    # fold 128/D rows per vreg row (lane-dense layout) with a segmented sum.

    num_tiles = (B + TB - 1) // TB
    if num_splits is None:
        NC = 2 if num_tiles >= 2 else 1    # v7x: one split per TensorCore
    else:
        NC = max(1, min(int(num_splits), num_tiles))
    T = (num_tiles + NC - 1) // NC         # inner (accumulation) grid extent per split
    needs_mask = (NC * T * TB) != B
    last_tile = num_tiles - 1

    def feat_index_map(c, i):
        # Clamp so rectangular-grid overhang never indexes past the last tile;
        # the in-kernel row mask zeroes any replayed tile's contribution.
        return (jnp.minimum(c * T + i, last_tile), 0)

    def lab_index_map(c, i):
        return (jnp.minimum(c * T + i, last_tile), 0)

    kernel = functools.partial(_contrastive_loss_kernel, batch=B, tile_rows=TB,
                               tiles_per_split=T, needs_mask=needs_mask)

    partials = pl.pallas_call(
        kernel,
        out_shape=jax.ShapeDtypeStruct((NC, 1, 128), jnp.float32),
        grid_spec=pltpu.PrefetchScalarGridSpec(
            num_scalar_prefetch=0,
            grid=(NC, T),
            in_specs=[
                pl.BlockSpec((TB, D), feat_index_map),
                pl.BlockSpec((TB, D), feat_index_map),
                pl.BlockSpec((TB, 1), lab_index_map),   # labels stay in VMEM (cheap)
            ],
            out_specs=pl.BlockSpec((1, 1, 128), lambda c, i: (c, 0, 0)),
            scratch_shapes=[pltpu.VMEM((TB, 1), jnp.float32)],
        ),
        compiler_params=pltpu.CompilerParams(
            # outer split axis can go to separate TensorCores (v7x); inner axis
            # carries the running per-split sum -> must stay "arbitrary".
            dimension_semantics=("parallel", "arbitrary"),
            vmem_limit_bytes=vmem_limit,
        ),
    )(features1, features2, labels2d)

    return jnp.sum(partials[:, 0, 0]) / B


def contrastive_loss_ref(features1, features2, labels):
    # Plain-JAX reference replicating the PyTorch semantics.
    diff = features1.astype(jnp.float32) - features2.astype(jnp.float32) + EPS
    dist = jnp.sqrt(jnp.sum(diff * diff, axis=-1))
    loss_same = (1.0 - labels) * dist ** 2
    loss_diff = labels * jnp.maximum(MARGIN - dist, 0.0) ** 2
    return jnp.mean(loss_same + loss_diff)


if __name__ == "__main__":
    key = jax.random.PRNGKey(0)
    k1, k2, k3 = jax.random.split(key, 3)

    # Main check: small shapes consistent with the module (pairs of feature rows).
    B, D = 8, 32
    features1 = jax.random.normal(k1, (B, D), dtype=jnp.float32)
    features2 = jax.random.normal(k2, (B, D), dtype=jnp.float32)
    labels = jax.random.bernoulli(k3, 0.5, (B,)).astype(jnp.float32)

    loss = jax.block_until_ready(contrastive_loss(features1, features2, labels))
    ref = contrastive_loss_ref(features1, features2, labels)
    assert jnp.allclose(loss, ref, rtol=1e-5, atol=1e-5), (loss, ref)

    # Ragged batch with a forced small tile and a 2-way split: exercises the
    # multi-step accumulator, the clamped edge/replay tiles and the row mask.
    B2 = 20
    k4, k5, k6 = jax.random.split(k3, 3)
    f1b = jax.random.normal(k4, (B2, D), dtype=jnp.float32)
    f2b = jax.random.normal(k5, (B2, D), dtype=jnp.float32)
    labb = jax.random.bernoulli(k6, 0.5, (B2,)).astype(jnp.float32)

    loss2 = jax.block_until_ready(
        contrastive_loss(f1b, f2b, labb, tile_rows=8, num_splits=2))
    ref2 = contrastive_loss_ref(f1b, f2b, labb)
    assert jnp.allclose(loss2, ref2, rtol=1e-5, atol=1e-5), (loss2, ref2)

    print("KERNEL_OK")
</pallas_src>

<mosaic_0001>
module attributes {stable_mosaic.version = 11 : i64} {
  func.func @_contrastive_loss_kernel(%arg0: i32, %arg1: i32, %arg2: memref<8x32xf32, #tpu.memory_space<vmem>>, %arg3: memref<8x32xf32, #tpu.memory_space<vmem>>, %arg4: memref<8x1xf32, #tpu.memory_space<vmem>>, %arg5: memref<1x1x128xf32, #tpu.memory_space<vmem>>, %arg6: memref<8x1xf32, #tpu.memory_space<vmem>>) attributes {dimension_semantics = [#tpu.dimension_semantics<parallel>, #tpu.dimension_semantics<arbitrary>], iteration_bounds = array<i64: 1, 1>, scalar_prefetch = 0 : i64, scratch_operands = 1 : i64, tpu.core_type = #tpu.core_type<tc>, window_params = [{transform_indices = @transform_0, window_bounds = array<i64: 8, 32>}, {transform_indices = @transform_1, window_bounds = array<i64: 8, 32>}, {transform_indices = @transform_2, window_bounds = array<i64: 8, 1>}, {transform_indices = @transform_3, window_bounds = array<i64: 1, 1, 128>}]} {
    %c0_i32 = arith.constant 0 : i32
    %0 = arith.cmpi eq, %arg1, %c0_i32 : i32
    %1 = arith.extui %0 : i1 to i32
    %c0_i32_0 = arith.constant 0 : i32
    %2 = arith.cmpi ne, %1, %c0_i32_0 : i32
    scf.if %2 {
      %cst_16 = arith.constant 0.000000e+00 : f32
      %29 = vector.broadcast %cst_16 : f32 to vector<8x1xf32>
      %c0_17 = arith.constant 0 : index
      %c0_18 = arith.constant 0 : index
      %30 = vector.load %arg6[%c0_17, %c0_18] : memref<8x1xf32, #tpu.memory_space<vmem>>, vector<8x1xf32>
      tpu.vector_store %arg6[%c0_17, %c0_18], %29 {strides = array<i32>} : memref<8x1xf32, #tpu.memory_space<vmem>>, vector<8x1xf32>,
    } else {
    }
    %c0 = arith.constant 0 : index
    %c0_1 = arith.constant 0 : index
    %3 = vector.load %arg2[%c0, %c0_1] : memref<8x32xf32, #tpu.memory_space<vmem>>, vector<8x32xf32>
    %c0_2 = arith.constant 0 : index
    %c0_3 = arith.constant 0 : index
    %4 = vector.load %arg3[%c0_2, %c0_3] : memref<8x32xf32, #tpu.memory_space<vmem>>, vector<8x32xf32>
    %c0_4 = arith.constant 0 : index
    %c0_5 = arith.constant 0 : index
    %5 = vector.load %arg4[%c0_4, %c0_5] : memref<8x1xf32, #tpu.memory_space<vmem>>, vector<8x1xf32>
    %6 = arith.subf %3, %4 : vector<8x32xf32>
    %cst = arith.constant 9.99999997E-7 : f32
    %7 = vector.broadcast %cst : f32 to vector<8x32xf32>
    %8 = arith.addf %6, %7 : vector<8x32xf32>
    %9 = arith.mulf %8, %8 : vector<8x32xf32>
    %cst_6 = arith.constant dense<0.000000e+00> : vector<8xf32>
    %10 = vector.multi_reduction <add>, %9, %cst_6 [1] : vector<8x32xf32> to vector<8xf32>
    %11 = vector.shape_cast %10 : vector<8xf32> to vector<8x1xf32>
    %12 = math.sqrt %11 : vector<8x1xf32>
    %cst_7 = arith.constant 1.000000e+00 : f32
    %13 = vector.broadcast %cst_7 : f32 to vector<8x1xf32>
    %14 = arith.subf %13, %12 : vector<8x1xf32>
    %cst_8 = arith.constant 0.000000e+00 : f32
    %15 = vector.broadcast %cst_8 : f32 to vector<8x1xf32>
    %16 = arith.maximumf %14, %15 : vector<8x1xf32>
    %cst_9 = arith.constant 1.000000e+00 : f32
    %17 = vector.broadcast %cst_9 : f32 to vector<8x1xf32>
    %18 = arith.subf %17, %5 : vector<8x1xf32>
    %19 = arith.mulf %18, %11 : vector<8x1xf32>
    %20 = arith.mulf %16, %16 : vector<8x1xf32>
    %21 = arith.mulf %5, %20 : vector<8x1xf32>
    %22 = arith.addf %19, %21 : vector<8x1xf32>
    %c0_10 = arith.constant 0 : index
    %c0_11 = arith.constant 0 : index
    %23 = vector.load %arg6[%c0_10, %c0_11] : memref<8x1xf32, #tpu.memory_space<vmem>>, vector<8x1xf32>
    %24 = arith.addf %23, %22 : vector<8x1xf32>
    %c0_12 = arith.constant 0 : index
    %c0_13 = arith.constant 0 : index
    %25 = vector.load %arg6[%c0_12, %c0_13] : memref<8x1xf32, #tpu.memory_space<vmem>>, vector<8x1xf32>
    tpu.vector_store %arg6[%c0_12, %c0_13], %24 {strides = array<i32>} : memref<8x1xf32, #tpu.memory_space<vmem>>, vector<8x1xf32>,
    %c0_i32_14 = arith.constant 0 : i32
    %26 = arith.cmpi eq, %arg1, %c0_i32_14 : i32
    %27 = arith.extui %26 : i1 to i32
    %c0_i32_15 = arith.constant 0 : i32
    %28 = arith.cmpi ne, %27, %c0_i32_15 : i32
    scf.if %28 {
      %c0_16 = arith.constant 0 : index
      %c0_17 = arith.constant 0 : index
      %29 = vector.load %arg6[%c0_16, %c0_17] : memref<8x1xf32, #tpu.memory_space<vmem>>, vector<8x1xf32>
      %30 = vector.shape_cast %29 : vector<8x1xf32> to vector<1x8x1xf32>
      %cst_18 = arith.constant dense<0.000000e+00> : vector<1xf32>
      %31 = vector.multi_reduction <add>, %30, %cst_18 [1, 2] : vector<1x8x1xf32> to vector<1xf32>
      %32 = vector.shape_cast %31 : vector<1xf32> to vector<1x1x1xf32>
      %33 = vector.extract %32[0, 0, 0] : f32 from vector<1x1x1xf32>
      %34 = vector.broadcast %33 : f32 to vector<1x1x128xf32>
      %c0_19 = arith.constant 0 : index
      %c0_20 = arith.constant 0 : index
      %c0_21 = arith.constant 0 : index
      %35 = vector.load %arg5[%c0_19, %c0_20, %c0_21] : memref<1x1x128xf32, #tpu.memory_space<vmem>>, vector<1x1x128xf32>
      tpu.vector_store %arg5[%c0_19, %c0_20, %c0_21], %34 {strides = array<i32>} : memref<1x1x128xf32, #tpu.memory_space<vmem>>, vector<1x1x128xf32>,
    } else {
    }
    return
  }
  func.func @transform_0(%arg0: i32, %arg1: i32) -> (i32, i32) {
    %c1_i32 = arith.constant 1 : i32
    %0 = arith.muli %arg0, %c1_i32 : i32
    %1 = arith.addi %0, %arg1 : i32
    %c0_i32 = arith.constant 0 : i32
    %2 = arith.minsi %1, %c0_i32 : i32
    %c0_i32_0 = arith.constant 0 : i32
    %c0_i32_1 = arith.constant 0 : i32
    return %2, %c0_i32_0 : i32, i32
  }
  func.func @transform_1(%arg0: i32, %arg1: i32) -> (i32, i32) {
    %c1_i32 = arith.constant 1 : i32
    %0 = arith.muli %arg0, %c1_i32 : i32
    %1 = arith.addi %0, %arg1 : i32
    %c0_i32 = arith.constant 0 : i32
    %2 = arith.minsi %1, %c0_i32 : i32
    %c0_i32_0 = arith.constant 0 : i32
    %c0_i32_1 = arith.constant 0 : i32
    return %2, %c0_i32_0 : i32, i32
  }
  func.func @transform_2(%arg0: i32, %arg1: i32) -> (i32, i32) {
    %c1_i32 = arith.constant 1 : i32
    %0 = arith.muli %arg0, %c1_i32 : i32
    %1 = arith.addi %0, %arg1 : i32
    %c0_i32 = arith.constant 0 : i32
    %2 = arith.minsi %1, %c0_i32 : i32
    %c0_i32_0 = arith.constant 0 : i32
    %c0_i32_1 = arith.constant 0 : i32
    return %2, %c0_i32_0 : i32, i32
  }
  func.func @transform_3(%arg0: i32, %arg1: i32) -> (i32, i32, i32) {
    %c0_i32 = arith.constant 0 : i32
    %c0_i32_0 = arith.constant 0 : i32
    %c0_i32_1 = arith.constant 0 : i32
    return %arg0, %c0_i32, %c0_i32_0 : i32, i32, i32
  }
}

</mosaic_0001>

<bundles_post_ra>
// kernel: tpu_custom_call.1
= control target key start
LH: loop header
LB: loop body
LE: loop exit
PB: predicated region body
PF: predicated region fallthrough
CT: control target
= control target key end

     0   :  { %8 = vsyncpa [#allocation4], 0  ;;  %s257_s0 = inlined_call_operand.vmem [shape: f32[8,32], index: 0, kind: input, shape index: {}]   ;;  %s258_s1 = inlined_call_operand.hbm [shape: f32[8,32], index: 1, kind: input, shape index: {}]   ;;  %s259_s2 = inlined_call_operand.vmem [shape: f32[8,1], index: 2, kind: input, shape index: {}]   ;;  %s260_s3 = inlined_call_operand.hbm [shape: f32[1,1,128], index: 3, kind: output, shape index: {}]  }
   0x1   :  { %9 = vsyncpa [#allocation5], 0  ;;  %s219_s12 = smov [#allocation3]  }
   0x2   :  { %s33_s13 = sshll.u32 %s219_s12, 4  ;;  %s34_s13 = int_to_ptr.vmem [resolvable:$true] %s33_s13 }
   0x3   :  { %s183_s14 = scalar_lea.vmem %s34_s13, 128  ;;  %p188_p1 = scmp.lt.s32.totalorder %s34_s13, %s34_s13 }
   0x4   :  { %p184_p0 = scmp.ne.s32.totalorder %s34_s13, %s183_s14  ;;  %p189_p2 = scmp.lt.s32.totalorder %s183_s14, %s183_s14 }
   0x6   :  { %p190_p3 = por %p189_p2, %p188_p1 }
   0x8   :  { %p191_p4 = pnand %p190_p3, %p184_p0 }
   0xa   :  { %194 = shalt.err (!%p191_p4)
}
   0xb   :  { %36 = dma.hbm_to_vmem [thread:$0]  %s258_s1, 128, %s34_s13, [#allocation4]  }
   0xc   :  { %215 = dma.done.wait [#allocation4], 128  }
   0xd   :  { %216 = vsyncadd [#allocation4], 4294967168  ;;  %v95_v0 = vld [vmem:[%s257_s0] sm:$0xff]  ;;  %v96_v1 = vld [vmem:[#allocation3] sm:$0xff]  ;;  %vm101_vm0 = vcmask 261120   ;;  %vm93_vm1 = vcmask 7168  }
   0xe   :  { %v98_v2 = vsub.f32 %v95_v0, %v96_v1  ;;  %v220_v6 = vmov 0.0   ;;  %v97_v12 = vld [vmem:[%s259_s2] sm:$0xff]  ;;  %s221_s2 = smov [#allocation6]  }
   0xf   :  { %94 = vst.msk [vmem:[#allocation2] sm:$0xff] %vm93_vm1, %v220_v6  ;;  %v114_v15 = vsub.f32 1.0, %v97_v12  ;;  %s145_s19 = sshll.u32 %s221_s2, 4  ;;  %s146_s19 = int_to_ptr.vmem [resolvable:$true] %s145_s19 }
  0x10   :  { %v99_v3 = vadd.f32 1e-06, %v98_v2  ;;  %s195_s21 = scalar_lea.vmem %s146_s19, 16  ;;  %s199_s22 = scalar_lea.vmem %s146_s19, 32 }
  0x11   :  { %p196_p5 = scmp.ne.s32.totalorder %s146_s19, %s195_s21  ;;  %p200_p6 = scmp.lt.s32.totalorder %s146_s19, %s146_s19 }
  0x12   :  { %v100_v4 = vmul.f32 %v99_v3, %v99_v3  ;;  %p201_p7 = scmp.lt.s32.totalorder %s199_s22, %s195_s21 }
  0x14   :  { %v102_v5 = vsel %vm101_vm0, %v100_v4, 0.0  ;;  %p202_p8 = por %p201_p7, %p200_p6 }
  0x15   :  { %103 = vadd.xlane.f32.xlu0 %v102_v5 }
  0x16   :  { %v119_v20 = vld [vmem:[#allocation2] sm:$0xff]  ;;  %p203_p9 = pnand %p202_p8, %p196_p5 }
  0x9e   :  { %v104_v7 = vpop.xlane.xlu0 %103 }
  0x9f   :  { %173 = vrsqrt.f32 %v104_v7  ;;  %vm107_vm2 = vcmp.eq.f32.partialorder %v104_v7, inf  ;;  %v110_v10 = vand.u32 2147483648, %v104_v7  ;;  %vm109_vm3 = vcmp.eq.f32.partialorder %v104_v7, 0.0 }
  0xa0   :  { %v115_v18 = vmul.f32 %v114_v15, %v104_v7 }
  0xac   :  { %v174_v8 = vpop.eup %173 }
  0xad   :  { %v106_v9 = vmul.f32 %v174_v8, %v104_v7 }
  0xaf   :  { %v108_v11 = vsel %vm107_vm2, %v104_v7, %v106_v9 }
  0xb0   :  { %v111_v13 = vsel %vm109_vm3, %v110_v10, %v108_v11 }
  0xb1   :  { %v112_v14 = vsub.f32 1.0, %v111_v13 }
  0xb3   :  { %v113_v16 = vmax.f32 %v112_v14, 0.0 }
  0xb5   :  { %v116_v17 = vmul.f32 %v113_v16, %v113_v16 }
  0xb7   :  { %v117_v19 = vmul.f32 %v116_v17, %v97_v12 }
  0xb9   :  { %v118_v21 = vadd.f32 %v117_v19, %v115_v18 }
  0xbb   :  { %v120_v22 = vadd.f32 %v119_v20, %v118_v21 }
  0xbd   :  { %122 = vst.msk [vmem:[#allocation2] sm:$0xff] %vm93_vm1, %v120_v22 }
  0xc4   :  { %v126_v23 = vld [vmem:[#allocation2] sm:$0xff] }
  0xc5   :  { %v127_v24 = vsel %vm93_vm1, %v126_v23, 0.0 }
  0xc6   :  { %128 = vadd.xlane.f32.xlu0 %v127_v24 }
 0x14f   :  { %v129_v25 = vpop.xlane.xlu0 %128 }
 0x150   :  { %v130_v26 = vrot.slane %v129_v25, 4 }
 0x152   :  { %v131_v27 = vadd.f32 %v130_v26, %v129_v25 }
 0x154   :  { %v132_v28 = vrot.slane %v131_v27, 2 }
 0x156   :  { %v133_v29 = vadd.f32 %v132_v28, %v131_v27 }
 0x158   :  { %v134_v30 = vrot.slane %v133_v29, 1 }
 0x15a   :  { %v135_v31 = vadd.f32 %v134_v30, %v133_v29 }
 0x15c   :  { %168 = vpush %v135_v31 }
 0x18d   :  { %s169_s20 = spop %168 }
 0x18e   :  { %v137_v32 = vstv %s169_s20 }
 0x18f   :  { %138 = vst [vmem:[#allocation6] sm:$0x1] %v137_v32 }
 0x190   :  { %206 = shalt.err (!%p203_p9)
}
 0x191   :  { %148 = dma.vmem_to_hbm [thread:$0]  %s146_s19, 16, %s260_s3, [#allocation5]  }
 0x192   :  { %217 = dma.done.wait [#allocation5], 16  }
 0x193   :  { %218 = vsyncadd [#allocation5], 4294967280 }
 0x194   :  { %152 = vsyncpa [#allocation4], 1 }
 0x195   :  { %153 = vsyncpa [#allocation5], 1 }

</bundles_post_ra>
